<compile_context>
chip_gen: v5e
topology: v5e:2x2
jax: 0.10.0
libtpu: 0.0.40
codegen_flags: <defaults>
</compile_context>

<pallas_src>
import functools

import jax
import jax.numpy as jnp
from jax import lax
from jax.experimental import pallas as pl
from jax.experimental.pallas import tpu as pltpu


def _sgd_kernel(f_ref, t_ref, w_ref, b_ref, w_out_ref, b_out_ref,
                *, iterations, scale, fit_bias):
    # f: (Bt, N, D)   t: (Bt, 1, N)   w: (Bt, 1, D)   b: (Bt, 1, 1)
    f = f_ref[...]
    # Loop-invariant: transpose once per grid step, not once per iteration.
    fT = jnp.swapaxes(f, 1, 2)                          # (Bt, D, N)
    t = t_ref[...]
    w0 = w_ref[...]
    b0 = b_ref[...]

    def body(_, carry):
        w, b = carry
        # logits (Bt,1,N) = w (Bt,1,D) @ fT (Bt,D,N) — MXU-native, batched.
        logits = lax.dot_general(
            w, fT,
            dimension_numbers=(((2,), (1,)), ((0,), (0,))),
            preferred_element_type=jnp.float32)
        if fit_bias:
            logits = logits + b
        # Sigmoid via EUP (exp + reciprocal); approx=False keeps 1e-5 accuracy.
        probits = pl.reciprocal(1.0 + jnp.exp(-logits), approx=False)
        dz = probits - t                                 # (Bt, 1, N)
        # dw (Bt,1,D) = dz (Bt,1,N) @ f (Bt,N,D) — already MXU-native.
        dw = lax.dot_general(
            dz, f,
            dimension_numbers=(((2,), (1,)), ((0,), (0,))),
            preferred_element_type=jnp.float32)
        w = w - scale * dw
        if fit_bias:
            db = jnp.sum(dz, axis=2, keepdims=True)      # (Bt, 1, 1)
            b = b - scale * db
        return w, b

    # Short loops: fully unroll.  Long loops: partial unroll keeps the body
    # visible to the LLO scheduler while bounding code size.
    unroll = True if iterations <= 8 else 4
    w, b = lax.fori_loop(0, iterations, body, (w0, b0), unroll=unroll)

    w_out_ref[...] = w
    if fit_bias:
        b_out_ref[...] = b
    else:
        # Reference does bias * zeros (NaN-propagating, like torch).
        b_out_ref[...] = b0 * jnp.zeros_like(b0)


def logistic_regression_training(features, targets, weights, bias,
                                 *, iterations=1, learning_rate=1.0,
                                 fit_bias=True):
    """Pallas TPU implementation of LogisticRegressionTraining.forward.

    features: (B, N, D) f32, targets: (B, N, 1), weights: (B, D, 1),
    bias: (B, 1, 1).  Returns (new_weights (B, D, 1), new_bias (B, 1, 1)).
    """
    B, N, D = features.shape
    assert targets.shape == (B, N, 1)
    assert weights.shape == (B, D, 1)
    assert bias.shape == (B, 1, 1)

    f32 = jnp.float32
    features = features.astype(f32)
    # Lane-dense row layouts for the kernel (transposed back on the way out).
    t_row = jnp.swapaxes(targets.astype(f32), 1, 2)      # (B, 1, N)
    w_row = jnp.swapaxes(weights.astype(f32), 1, 2)      # (B, 1, D)
    b_in = bias.astype(f32)                              # (B, 1, 1)

    # Fold learning_rate and 1/N into one compile-time constant.
    scale = float(learning_rate) / float(N)

    # --- per-generation VMEM budget ---------------------------------------
    try:
        vmem_cap = int(pltpu.get_tpu_info().vmem_capacity_bytes)
    except Exception:
        vmem_cap = 64 * 1024 * 1024          # conservative (v7x-sized) fallback
    # ~48 MiB on v7x (64 MiB phys), ~96 MiB on v5e/v6e (128 MiB phys).
    vmem_limit = max(32 * 1024 * 1024, (vmem_cap * 3) // 4)
    tile_budget = vmem_limit // 4            # headroom for double-buffering etc.

    # --- pick Bt (batch problems per grid step) ----------------------------
    # Per-problem VMEM estimate: f + hoisted fT + small row vectors (f32).
    per_problem_bytes = 4 * (3 * N * D + 4 * N + 8 * D + 16)
    bt_max = max(1, tile_budget // per_problem_bytes)
    # Keep >= 2 grid steps whenever B >= 2 so the "parallel" batch axis can
    # shard across both TensorCores on v7x (negligible cost on v5e/v6e).
    Bt = max(1, min(bt_max, (B + 1) // 2))

    # Non-divisor Bt: zero-pad the batch dim (sigmoid(0)=0.5, no NaNs) and
    # slice the padded problems off afterwards.
    n_blocks = -(-B // Bt)
    B_pad = n_blocks * Bt
    if B_pad != B:
        pad = B_pad - B
        features = jnp.concatenate(
            [features, jnp.zeros((pad, N, D), f32)], axis=0)
        t_row = jnp.concatenate([t_row, jnp.zeros((pad, 1, N), f32)], axis=0)
        w_row = jnp.concatenate([w_row, jnp.zeros((pad, 1, D), f32)], axis=0)
        b_in = jnp.concatenate([b_in, jnp.zeros((pad, 1, 1), f32)], axis=0)

    kernel = functools.partial(
        _sgd_kernel,
        iterations=int(iterations),
        scale=scale,                 # plain Python float -> embedded constant
        fit_bias=bool(fit_bias),
    )

    grid_spec = pltpu.PrefetchScalarGridSpec(
        num_scalar_prefetch=0,
        grid=(n_blocks,),
        in_specs=[
            pl.BlockSpec((Bt, N, D), lambda i: (i, 0, 0)),   # features
            pl.BlockSpec((Bt, 1, N), lambda i: (i, 0, 0)),   # targets (row)
            pl.BlockSpec((Bt, 1, D), lambda i: (i, 0, 0)),   # weights (row)
            pl.BlockSpec((Bt, 1, 1), lambda i: (i, 0, 0)),   # bias
        ],
        out_specs=[
            pl.BlockSpec((Bt, 1, D), lambda i: (i, 0, 0)),   # new weights (row)
            pl.BlockSpec((Bt, 1, 1), lambda i: (i, 0, 0)),   # new bias
        ],
    )

    cost = pl.CostEstimate(
        flops=int(iterations) * B_pad * 4 * N * D,
        transcendentals=int(iterations) * B_pad * N,
        bytes_accessed=4 * B_pad * (N * D + N + 2 * D + 2),
    )

    w_out_row, b_out = pl.pallas_call(
        kernel,
        grid_spec=grid_spec,
        out_shape=(
            jax.ShapeDtypeStruct((B_pad, 1, D), f32),
            jax.ShapeDtypeStruct((B_pad, 1, 1), f32),
        ),
        compiler_params=pltpu.CompilerParams(
            dimension_semantics=("parallel",),
            vmem_limit_bytes=int(vmem_limit),
        ),
        cost_estimate=cost,
    )(features, t_row, w_row, b_in)

    return jnp.swapaxes(w_out_row[:B], 1, 2), b_out[:B]


def _reference(features, targets, weights, bias,
               *, iterations=1, learning_rate=1.0, fit_bias=True):
    """Plain-JAX reference mirroring the torch forward exactly."""
    for _ in range(iterations):
        logits = features @ weights
        if fit_bias:
            logits = logits + bias
        probits = jax.nn.sigmoid(logits)
        dz = probits - targets
        dw = jnp.swapaxes(features, 1, 2) @ dz / features.shape[1]
        db = jnp.sum(dz, axis=1, keepdims=True) / dz.shape[1]
        weights = weights - learning_rate * dw
        if fit_bias:
            bias = bias - learning_rate * db
        else:
            bias = bias * jnp.zeros_like(bias)
    return weights, bias


if __name__ == "__main__":
    key = jax.random.PRNGKey(0)
    k1, k2, k3, k4 = jax.random.split(key, 4)

    # --- case 1: fit_bias=True, short (fully unrolled) loop ----------------
    B, N, D = 2, 8, 4
    ITERS, LR = 3, 1.0

    features = jax.random.normal(k1, (B, N, D), dtype=jnp.float32)
    targets = (jax.random.uniform(k2, (B, N, 1)) > 0.5).astype(jnp.float32)
    weights = jax.random.normal(k3, (B, D, 1), dtype=jnp.float32) * 0.1
    bias = jax.random.normal(k4, (B, 1, 1), dtype=jnp.float32) * 0.1

    new_w, new_b = logistic_regression_training(
        features, targets, weights, bias,
        iterations=ITERS, learning_rate=LR, fit_bias=True)
    jax.block_until_ready((new_w, new_b))
    ref_w, ref_b = _reference(features, targets, weights, bias,
                              iterations=ITERS, learning_rate=LR, fit_bias=True)
    assert new_w.shape == (B, D, 1) and new_b.shape == (B, 1, 1)
    assert jnp.allclose(new_w, ref_w, atol=1e-5, rtol=1e-5), "weights mismatch"
    assert jnp.allclose(new_b, ref_b, atol=1e-5, rtol=1e-5), "bias mismatch"

    # --- case 2: fit_bias=False (bias must come back as zeros) -------------
    nb_w, nb_b = logistic_regression_training(
        features, targets, weights, bias,
        iterations=ITERS, learning_rate=LR, fit_bias=False)
    jax.block_until_ready((nb_w, nb_b))
    rb_w, rb_b = _reference(features, targets, weights, bias,
                            iterations=ITERS, learning_rate=LR, fit_bias=False)
    assert jnp.allclose(nb_w, rb_w, atol=1e-5, rtol=1e-5), "weights mismatch (no bias)"
    assert jnp.allclose(nb_b, rb_b, atol=1e-5, rtol=1e-5), "bias mismatch (no bias)"

    # --- case 3: odd batch + long loop (padded grid, partial unroll) -------
    k5, k6, k7, k8 = jax.random.split(jax.random.PRNGKey(1), 4)
    B2, N2, D2 = 3, 16, 8
    ITERS2 = 12
    features2 = jax.random.normal(k5, (B2, N2, D2), dtype=jnp.float32)
    targets2 = (jax.random.uniform(k6, (B2, N2, 1)) > 0.5).astype(jnp.float32)
    weights2 = jax.random.normal(k7, (B2, D2, 1), dtype=jnp.float32) * 0.1
    bias2 = jax.random.normal(k8, (B2, 1, 1), dtype=jnp.float32) * 0.1

    lw, lb = logistic_regression_training(
        features2, targets2, weights2, bias2,
        iterations=ITERS2, learning_rate=0.5, fit_bias=True)
    jax.block_until_ready((lw, lb))
    rw, rb = _reference(features2, targets2, weights2, bias2,
                        iterations=ITERS2, learning_rate=0.5, fit_bias=True)
    assert lw.shape == (B2, D2, 1) and lb.shape == (B2, 1, 1)
    assert jnp.allclose(lw, rw, atol=1e-4, rtol=1e-4), "weights mismatch (long)"
    assert jnp.allclose(lb, rb, atol=1e-4, rtol=1e-4), "bias mismatch (long)"

    print("KERNEL_OK")
</pallas_src>

<mosaic_0001>
module attributes {stable_mosaic.version = 11 : i64} {
  func.func @_sgd_kernel(%arg0: i32, %arg1: memref<1x8x4xf32, #tpu.memory_space<vmem>>, %arg2: memref<1x1x8xf32, #tpu.memory_space<vmem>>, %arg3: memref<1x1x4xf32, #tpu.memory_space<vmem>>, %arg4: memref<1x1x1xf32, #tpu.memory_space<vmem>>, %arg5: memref<1x1x4xf32, #tpu.memory_space<vmem>>, %arg6: memref<1x1x1xf32, #tpu.memory_space<vmem>>) attributes {dimension_semantics = [#tpu.dimension_semantics<parallel>], iteration_bounds = array<i64: 2>, scalar_prefetch = 0 : i64, scratch_operands = 0 : i64, tpu.core_type = #tpu.core_type<tc>, window_params = [{transform_indices = @transform_0, window_bounds = array<i64: 1, 8, 4>}, {transform_indices = @transform_1, window_bounds = array<i64: 1, 1, 8>}, {transform_indices = @transform_2, window_bounds = array<i64: 1, 1, 4>}, {transform_indices = @transform_3, window_bounds = array<i64: 1, 1, 1>}, {transform_indices = @transform_4, window_bounds = array<i64: 1, 1, 4>}, {transform_indices = @transform_5, window_bounds = array<i64: 1, 1, 1>}]} {
    %c0 = arith.constant 0 : index
    %c0_0 = arith.constant 0 : index
    %c0_1 = arith.constant 0 : index
    %0 = vector.load %arg1[%c0, %c0_0, %c0_1] : memref<1x8x4xf32, #tpu.memory_space<vmem>>, vector<1x8x4xf32>
    %1 = tpu.transpose %0, [0, 2, 1] : vector<1x8x4xf32> -> vector<1x4x8xf32>
    %c0_2 = arith.constant 0 : index
    %c0_3 = arith.constant 0 : index
    %c0_4 = arith.constant 0 : index
    %2 = vector.load %arg2[%c0_2, %c0_3, %c0_4] : memref<1x1x8xf32, #tpu.memory_space<vmem>>, vector<1x1x8xf32>
    %c0_5 = arith.constant 0 : index
    %c0_6 = arith.constant 0 : index
    %c0_7 = arith.constant 0 : index
    %3 = vector.load %arg3[%c0_5, %c0_6, %c0_7] : memref<1x1x4xf32, #tpu.memory_space<vmem>>, vector<1x1x4xf32>
    %c0_8 = arith.constant 0 : index
    %c0_9 = arith.constant 0 : index
    %c0_10 = arith.constant 0 : index
    %4 = vector.load %arg4[%c0_8, %c0_9, %c0_10] : memref<1x1x1xf32, #tpu.memory_space<vmem>>, vector<1x1x1xf32>
    %c0_i32 = arith.constant 0 : i32
    %cst = arith.constant dense<0.000000e+00> : vector<1x1x8xf32>
    %5 = tpu.matmul %3, %1, %cst {dimension_numbers = #tpu.dot_dimension_numbers<[2], [1], [1], [2], [0, 0, 0, 1, 1, 2], [0], [0]>} : vector<1x1x4xf32>, vector<1x4x8xf32>, vector<1x1x8xf32> -> vector<1x1x8xf32>
    %6 = vector.broadcast %4 : vector<1x1x1xf32> to vector<1x1x8xf32>
    %7 = arith.addf %5, %6 : vector<1x1x8xf32>
    %cst_11 = arith.constant 0.000000e+00 : f32
    %8 = vector.broadcast %cst_11 : f32 to vector<1x1x8xf32>
    %9 = arith.subf %8, %7 : vector<1x1x8xf32>
    %10 = math.exp %9 : vector<1x1x8xf32>
    %cst_12 = arith.constant 1.000000e+00 : f32
    %11 = vector.broadcast %cst_12 : f32 to vector<1x1x8xf32>
    %12 = arith.addf %11, %10 : vector<1x1x8xf32>
    %13 = tpu.reciprocal %12 : vector<1x1x8xf32> -> vector<1x1x8xf32>
    %14 = arith.subf %13, %2 : vector<1x1x8xf32>
    %cst_13 = arith.constant dense<0.000000e+00> : vector<1x1x4xf32>
    %15 = tpu.matmul %14, %0, %cst_13 {dimension_numbers = #tpu.dot_dimension_numbers<[2], [1], [1], [2], [0, 0, 0, 1, 1, 2], [0], [0]>} : vector<1x1x8xf32>, vector<1x8x4xf32>, vector<1x1x4xf32> -> vector<1x1x4xf32>
    %cst_14 = arith.constant 1.250000e-01 : f32
    %16 = vector.broadcast %cst_14 : f32 to vector<1x1x4xf32>
    %17 = arith.mulf %16, %15 : vector<1x1x4xf32>
    %18 = arith.subf %3, %17 : vector<1x1x4xf32>
    %cst_15 = arith.constant dense<0.000000e+00> : vector<1x1xf32>
    %19 = vector.multi_reduction <add>, %14, %cst_15 [2] : vector<1x1x8xf32> to vector<1x1xf32>
    %20 = vector.shape_cast %19 : vector<1x1xf32> to vector<1x1x1xf32>
    %cst_16 = arith.constant 1.250000e-01 : f32
    %21 = vector.broadcast %cst_16 : f32 to vector<1x1x1xf32>
    %22 = arith.mulf %21, %20 : vector<1x1x1xf32>
    %23 = arith.subf %4, %22 : vector<1x1x1xf32>
    %c1_i32 = arith.constant 1 : i32
    %cst_17 = arith.constant dense<0.000000e+00> : vector<1x1x8xf32>
    %24 = tpu.matmul %18, %1, %cst_17 {dimension_numbers = #tpu.dot_dimension_numbers<[2], [1], [1], [2], [0, 0, 0, 1, 1, 2], [0], [0]>} : vector<1x1x4xf32>, vector<1x4x8xf32>, vector<1x1x8xf32> -> vector<1x1x8xf32>
    %25 = vector.broadcast %23 : vector<1x1x1xf32> to vector<1x1x8xf32>
    %26 = arith.addf %24, %25 : vector<1x1x8xf32>
    %cst_18 = arith.constant 0.000000e+00 : f32
    %27 = vector.broadcast %cst_18 : f32 to vector<1x1x8xf32>
    %28 = arith.subf %27, %26 : vector<1x1x8xf32>
    %29 = math.exp %28 : vector<1x1x8xf32>
    %cst_19 = arith.constant 1.000000e+00 : f32
    %30 = vector.broadcast %cst_19 : f32 to vector<1x1x8xf32>
    %31 = arith.addf %30, %29 : vector<1x1x8xf32>
    %32 = tpu.reciprocal %31 : vector<1x1x8xf32> -> vector<1x1x8xf32>
    %33 = arith.subf %32, %2 : vector<1x1x8xf32>
    %cst_20 = arith.constant dense<0.000000e+00> : vector<1x1x4xf32>
    %34 = tpu.matmul %33, %0, %cst_20 {dimension_numbers = #tpu.dot_dimension_numbers<[2], [1], [1], [2], [0, 0, 0, 1, 1, 2], [0], [0]>} : vector<1x1x8xf32>, vector<1x8x4xf32>, vector<1x1x4xf32> -> vector<1x1x4xf32>
    %cst_21 = arith.constant 1.250000e-01 : f32
    %35 = vector.broadcast %cst_21 : f32 to vector<1x1x4xf32>
    %36 = arith.mulf %35, %34 : vector<1x1x4xf32>
    %37 = arith.subf %18, %36 : vector<1x1x4xf32>
    %cst_22 = arith.constant dense<0.000000e+00> : vector<1x1xf32>
    %38 = vector.multi_reduction <add>, %33, %cst_22 [2] : vector<1x1x8xf32> to vector<1x1xf32>
    %39 = vector.shape_cast %38 : vector<1x1xf32> to vector<1x1x1xf32>
    %cst_23 = arith.constant 1.250000e-01 : f32
    %40 = vector.broadcast %cst_23 : f32 to vector<1x1x1xf32>
    %41 = arith.mulf %40, %39 : vector<1x1x1xf32>
    %42 = arith.subf %23, %41 : vector<1x1x1xf32>
    %c2_i32 = arith.constant 2 : i32
    %cst_24 = arith.constant dense<0.000000e+00> : vector<1x1x8xf32>
    %43 = tpu.matmul %37, %1, %cst_24 {dimension_numbers = #tpu.dot_dimension_numbers<[2], [1], [1], [2], [0, 0, 0, 1, 1, 2], [0], [0]>} : vector<1x1x4xf32>, vector<1x4x8xf32>, vector<1x1x8xf32> -> vector<1x1x8xf32>
    %44 = vector.broadcast %42 : vector<1x1x1xf32> to vector<1x1x8xf32>
    %45 = arith.addf %43, %44 : vector<1x1x8xf32>
    %cst_25 = arith.constant 0.000000e+00 : f32
    %46 = vector.broadcast %cst_25 : f32 to vector<1x1x8xf32>
    %47 = arith.subf %46, %45 : vector<1x1x8xf32>
    %48 = math.exp %47 : vector<1x1x8xf32>
    %cst_26 = arith.constant 1.000000e+00 : f32
    %49 = vector.broadcast %cst_26 : f32 to vector<1x1x8xf32>
    %50 = arith.addf %49, %48 : vector<1x1x8xf32>
    %51 = tpu.reciprocal %50 : vector<1x1x8xf32> -> vector<1x1x8xf32>
    %52 = arith.subf %51, %2 : vector<1x1x8xf32>
    %cst_27 = arith.constant dense<0.000000e+00> : vector<1x1x4xf32>
    %53 = tpu.matmul %52, %0, %cst_27 {dimension_numbers = #tpu.dot_dimension_numbers<[2], [1], [1], [2], [0, 0, 0, 1, 1, 2], [0], [0]>} : vector<1x1x8xf32>, vector<1x8x4xf32>, vector<1x1x4xf32> -> vector<1x1x4xf32>
    %cst_28 = arith.constant 1.250000e-01 : f32
    %54 = vector.broadcast %cst_28 : f32 to vector<1x1x4xf32>
    %55 = arith.mulf %54, %53 : vector<1x1x4xf32>
    %56 = arith.subf %37, %55 : vector<1x1x4xf32>
    %cst_29 = arith.constant dense<0.000000e+00> : vector<1x1xf32>
    %57 = vector.multi_reduction <add>, %52, %cst_29 [2] : vector<1x1x8xf32> to vector<1x1xf32>
    %58 = vector.shape_cast %57 : vector<1x1xf32> to vector<1x1x1xf32>
    %cst_30 = arith.constant 1.250000e-01 : f32
    %59 = vector.broadcast %cst_30 : f32 to vector<1x1x1xf32>
    %60 = arith.mulf %59, %58 : vector<1x1x1xf32>
    %61 = arith.subf %42, %60 : vector<1x1x1xf32>
    %c0_31 = arith.constant 0 : index
    %c0_32 = arith.constant 0 : index
    %c0_33 = arith.constant 0 : index
    %62 = vector.load %arg5[%c0_31, %c0_32, %c0_33] : memref<1x1x4xf32, #tpu.memory_space<vmem>>, vector<1x1x4xf32>
    tpu.vector_store %arg5[%c0_31, %c0_32, %c0_33], %56 {strides = array<i32>} : memref<1x1x4xf32, #tpu.memory_space<vmem>>, vector<1x1x4xf32>,
    %c0_34 = arith.constant 0 : index
    %c0_35 = arith.constant 0 : index
    %c0_36 = arith.constant 0 : index
    %63 = vector.load %arg6[%c0_34, %c0_35, %c0_36] : memref<1x1x1xf32, #tpu.memory_space<vmem>>, vector<1x1x1xf32>
    tpu.vector_store %arg6[%c0_34, %c0_35, %c0_36], %61 {strides = array<i32>} : memref<1x1x1xf32, #tpu.memory_space<vmem>>, vector<1x1x1xf32>,
    return
  }
  func.func @transform_0(%arg0: i32) -> (i32, i32, i32) {
    %c0_i32 = arith.constant 0 : i32
    %c0_i32_0 = arith.constant 0 : i32
    %c0_i32_1 = arith.constant 0 : i32
    return %arg0, %c0_i32, %c0_i32_0 : i32, i32, i32
  }
  func.func @transform_1(%arg0: i32) -> (i32, i32, i32) {
    %c0_i32 = arith.constant 0 : i32
    %c0_i32_0 = arith.constant 0 : i32
    %c0_i32_1 = arith.constant 0 : i32
    return %arg0, %c0_i32, %c0_i32_0 : i32, i32, i32
  }
  func.func @transform_2(%arg0: i32) -> (i32, i32, i32) {
    %c0_i32 = arith.constant 0 : i32
    %c0_i32_0 = arith.constant 0 : i32
    %c0_i32_1 = arith.constant 0 : i32
    return %arg0, %c0_i32, %c0_i32_0 : i32, i32, i32
  }
  func.func @transform_3(%arg0: i32) -> (i32, i32, i32) {
    %c0_i32 = arith.constant 0 : i32
    %c0_i32_0 = arith.constant 0 : i32
    %c0_i32_1 = arith.constant 0 : i32
    return %arg0, %c0_i32, %c0_i32_0 : i32, i32, i32
  }
  func.func @transform_4(%arg0: i32) -> (i32, i32, i32) {
    %c0_i32 = arith.constant 0 : i32
    %c0_i32_0 = arith.constant 0 : i32
    %c0_i32_1 = arith.constant 0 : i32
    return %arg0, %c0_i32, %c0_i32_0 : i32, i32, i32
  }
  func.func @transform_5(%arg0: i32) -> (i32, i32, i32) {
    %c0_i32 = arith.constant 0 : i32
    %c0_i32_0 = arith.constant 0 : i32
    %c0_i32_1 = arith.constant 0 : i32
    return %arg0, %c0_i32, %c0_i32_0 : i32, i32, i32
  }
}

</mosaic_0001>

<bundles_post_ra>
// kernel: tpu_custom_call.1
= control target key start
LH: loop header
LB: loop body
LE: loop exit
PB: predicated region body
PF: predicated region fallthrough
CT: control target
= control target key end

     0   :  { %11 = vsyncpa [#allocation3], 0  ;;  %s925_s0 = inlined_call_operand.vmem [shape: f32[2,8,4], index: 0, kind: input, shape index: {}]   ;;  %s926_s1 = inlined_call_operand.vmem [shape: f32[2,1,8], index: 1, kind: input, shape index: {}]   ;;  %s927_s2 = inlined_call_operand.vmem [shape: f32[2,1,4], index: 2, kind: input, shape index: {}]   ;;  %s928_s3 = inlined_call_operand.vmem [shape: f32[2,1,1], index: 3, kind: input, shape index: {}]   ;;  %s929_s4 = inlined_call_operand.hbm [shape: f32[2,1,4], index: 4, kind: output, shape index: {0}]   ;;  %s930_s5 = inlined_call_operand.vmem [shape: f32[2,1,1], index: 5, kind: output, shape index: {1}]  }
   0x1   :  { %13 = vsyncpa [#allocation3 + $0x1], 0  ;;  %s804_s18 = smov 0   ;;  %s806_s19 = smov 0  }
   0x2   :  { %s808_s20 = smov 0   ;;  %s810_s21 = smov 0  }
   0x3 LB: > { %s825_s22 = sadd.s32 4294967295, %s771_s21   ;;  %s638_s23 = sadd.s32 4294967294, %s771_s21   ;;  %s771_s21 = sphi %s810_s21, %s936_s21   ;;  %s767_s20 = sphi %s808_s20, %s935_s20   ;;  %s763_s19 = sphi %s806_s19, %s934_s19   ;;  %s759_s18 = sphi %s804_s18, %s933_s18  }
   0x4   : > { %s829_s24 = sadd.s32 1, %s771_s21   ;;  %s130_s25 = sadd.s32 1, %s767_s20 }
   0x5   : > { %s127_s26 = ssub.s32 %s771_s21, %s829_s24  ;;  %p140_p0 = scmp.ne.s32.totalorder %s767_s20, %s763_s19 }
   0x6   : > { %p128_p1 = scmp.eq.s32.totalorder %s127_s26, 0  ;;  %p141_p2 = scmp.eq.s32.totalorder %s825_s22, 1 }
   0x7   : > { %p146_p3 = scmp.ne.s32.totalorder %s763_s19, %s759_s18  ;;  %p147_p4 = scmp.eq.s32.totalorder %s638_s23, 1 }
   0x8   : > { %s840_s27 = scalar_select %p128_p1, %s767_s20, %s130_s25  }
   0x9   : > { %p842_p5 = por %p141_p2, %p140_p0  ;;  %p846_p6 = por %p147_p4, %p146_p3 }
   0xa   : > { %p641_p7 = scmp.ge.s32.totalorder %s771_s21, 1  ;;  %p216_p8 = scmp.lt.s32.totalorder %s771_s21, 3 }
   0xc   : > { %p217_p9 = pnand %p641_p7, %p216_p8 }
   0xd   : > { %p254_p10 = scmp.lt.s32.totalorder (!%p217_p9), %s825_s22, 1  ;;  %s247_s7 = sand.u32 (!%p217_p9), 1, %s763_s19  }
   0xe   : > { %220 = sbr.rel (%p217_p9) target bundleno = 918 (0x396), region = 36  ;;  %s530_s10 = scalar_lea.hbm (!%p217_p9), %s929_s4, %s825_s22 }
   0xf   : > { %s248_s11 = scalar_lea.vmem (!%p217_p9), [#allocation2], %s247_s7  ;;  %s534_s13 = sshll.u32 (!%p217_p9), %s530_s10, 4  ;;  %s535_s13 = int_to_ptr.hbm [resolvable:$true] %s534_s13 }
  0x10   : > { %s723_s14 = sshra.s32 (!%p217_p9), %s535_s13, 4  ;;  %s729_s17 = scalar_lea.hbm (!%p217_p9), %s929_s4, 2  ;;  %s724_s14 = int_to_ptr.hbm [resolvable:$true] %s723_s14 }
  0x11   : > { %p730_p0 = scmp.lt.s32.totalorder (!%p217_p9), %s724_s14, %s929_s4 }
  0x13   : > { %v773_v0 = vmov 0   ;;  %s854_s30 = scalar_select %p254_p10, %s825_s22, 1  ;;  %vm280_vm0 = vcmask 31744   ;;  %vm326_vm5 = vcmask 64512   ;;  %vm352_vm6 = vcmask 57344  }
  0x14   : > { %694 = vset.pattern.permute.xlu0 %v773_v0  ;;  %695 = vset.pattern.permute.xlu1 %v773_v0  ;;  %vm516_vm15 = vcmask 0  }
  0x15   : > { %696 = vset.pattern.permute.xlu2 %v773_v0  ;;  %s642_s6 = sshll.u32 %s854_s30, 3  ;;  %s263_s9 = scalar_lea.vmem %s927_s2, %s854_s30 }
  0x16   : > { %s257_s12 = scalar_lea.vmem %s925_s0, %s642_s6  ;;  %s266_s15 = scalar_lea.vmem %s928_s3, %s854_s30  ;;  %v272_v3 = vld [vmem:[%s263_s9] sm:$0x1] }
  0x17   : > { %v270_v1 = vld [vmem:[%s257_s12] sm:$0xff]  ;;  %s260_s23 = scalar_lea.vmem %s926_s1, %s854_s30  ;;  %s269_s6 = scalar_lea.vmem %s930_s5, %s854_s30 }
  0x18   : > { %v273_v2 = vld [vmem:[%s266_s15] sm:$0x1]  ;;  %643 = vmatpush.xpose.msk.msra.mxu0 %vm280_vm0, %v270_v1  ;;  %345 = vmatpush.msra.mxu1 %v270_v1  ;;  %s532_s12 = sshll.u32 %s248_s11, 4  ;;  %s519_s30 = scalar_lea.sflag [#allocation3], %s247_s7  ;;  %s533_s12 = int_to_ptr.vmem [resolvable:$true] %s532_s12 }
  0x19   : > { %276 = vperm.xlu0 %694, %v273_v2   ;;  %646 = vmatpush.xpose.msk.msra.mxu2 %vm280_vm0, %v270_v1  ;;  %v876_v19 = vld [vmem:[%s260_s23] sm:$0x1]  ;;  %s725_s15 = scalar_lea.hbm %s724_s14, 1 }
  0x1a   : > { %424 = vmatpush.msra.mxu3 %v270_v1  ;;  %649 = vmatpush.xpose.msk.msrb.mxu1 %vm280_vm0, %v270_v1  ;;  %p726_p11 = scmp.ne.s32.totalorder %s724_s14, %s725_s15  ;;  %p731_p1 = scmp.lt.s32.totalorder %s729_s17, %s725_s15 }
  0x1b   : > { %644 = vmatmul.msk.f32.vlgmr.msra.gmra.mxu0 %vm280_vm0, %v272_v3 }
  0x1c   : > { %502 = vmatpush.msrb.mxu3 %v270_v1  ;;  %p727_p12 = pnand %p726_p11, %p842_p5  ;;  %p732_p2 = por %p731_p1, %p730_p0 }
  0x1e   : > { %p728_p13 = pneg %p727_p12 }
  0x20   : > { %p733_p3 = pnand %p732_p2, %p728_p13 }
  0x8b   : > { %v277_v4 = vpop.permute.xlu0 %276 }
  0x8c   : > { %v279_v5 = vperm.slane %v277_v4, 0 }
  0x98   : > { %v304_v6 = vpop.f32.mrf.mxu0 }
  0x99   : > { %v305_v7 = vadd.f32 %v304_v6, %v279_v5 }
  0x9b   : > { %v307_v8 = vsub.f32 0.0, %v305_v7 }
  0x9d   : > { %v308_v9 = vmul.f32 1.442695, %v307_v8 }
  0x9f   : > { %697 = vpow2.f32 %v308_v9 }
  0xa5   : > { %v698_v10 = vpop.eup %697 }
  0xa6   : > { %v310_v11 = vadd.f32 1.0, %v698_v10 }
  0xa8   : > { %699 = vrcp.f32 %v310_v11  ;;  %v322_v15 = vand.u32 2147483648, %v310_v11  ;;  %v320_v17 = vand.u32 2147483647, %v310_v11  ;;  %vm316_vm2 = vweird.f32 %v310_v11 }
  0xaa   : > { %v323_v20 = vor.u32 1.1754944e-38, %v322_v15  ;;  %vm321_vm4 = vcmp.eq.f32.partialorder %v320_v17, 8.507059e+37 }
  0xae   : > { %v700_v12 = vpop.eup %699 }
  0xaf   : > { %v312_v13 = vmul.f32 %v700_v12, %v310_v11  ;;  %vm317_vm1 = vweird.f32 %v700_v12 }
  0xb0   : > { %vm318_vm3 = vmor %vm316_vm2, %vm317_vm1 }
  0xb1   : > { %v313_v14 = vsub.f32 1.0, %v312_v13 }
  0xb3   : > { %v314_v16 = vmul.f32 %v700_v12, %v313_v14 }
  0xb5   : > { %v315_v18 = vadd.f32 %v700_v12, %v314_v16 }
  0xb7   : > { %v319_v21 = vsel %vm318_vm3, %v700_v12, %v315_v18 }
  0xb8   : > { %v324_v22 = vsel %vm321_vm4, %v323_v20, %v319_v21 }
  0xb9   : > { %v325_v23 = vsub.f32 %v324_v22, %v876_v19 }
  0xbb   : > { %645 = vmatmul.msk.f32.vlgmr.msra.gmra.mxu1 %vm326_vm5, %v325_v23  ;;  %v353_v24 = vsel %vm352_vm6, %v325_v23, 0.0 }
  0xbc   : > { %354 = vadd.xlane.f32.xlu0 %v353_v24 }
 0x12f   : > { %v355_v25 = vpop.xlane.xlu0 %354 }
 0x130   : > { %v356_v26 = vmul.f32 0.125, %v355_v25 }
 0x132   : > { %v357_v27 = vsub.f32 %v273_v2, %v356_v26 }
 0x134   : > { %360 = vperm.xlu1 %695, %v357_v27  }
 0x138   : > { %v347_v28 = vpop.f32.mrf.mxu1 }
 0x139   : > { %v350_v29 = vmul.f32 0.125, %v347_v28 }
 0x13b   : > { %v351_v30 = vsub.f32 %v272_v3, %v350_v29 }
 0x13d   : > { %647 = vmatmul.msk.f32.vlgmr.msra.gmra.mxu2 %vm280_vm0, %v351_v30 }
 0x1a6   : > { %v361_v31 = vpop.permute.xlu1 %360 }
 0x1a7   : > { %v363_v32 = vperm.slane %v361_v31, 0 }
 0x1c0   : > { %v384_v33 = vpop.f32.mrf.mxu2 }
 0x1c1   : > { %v385_v34 = vadd.f32 %v384_v33, %v363_v32 }
 0x1c3   : > { %v387_v35 = vsub.f32 0.0, %v385_v34 }
 0x1c5   : > { %v388_v36 = vmul.f32 1.442695, %v387_v35 }
 0x1c7   : > { %701 = vpow2.f32 %v388_v36 }
 0x1cd   : > { %v702_v37 = vpop.eup %701 }
 0x1ce   : > { %v390_v38 = vadd.f32 1.0, %v702_v37 }
 0x1d0   : > { %703 = vrcp.f32 %v390_v38  ;;  %v402_v42 = vand.u32 2147483648, %v390_v38  ;;  %v400_v44 = vand.u32 2147483647, %v390_v38  ;;  %vm396_vm8 = vweird.f32 %v390_v38 }
 0x1d2   : > { %v403_v46 = vor.u32 1.1754944e-38, %v402_v42  ;;  %vm401_vm10 = vcmp.eq.f32.partialorder %v400_v44, 8.507059e+37 }
 0x1d6   : > { %v704_v39 = vpop.eup %703 }
 0x1d7   : > { %v392_v40 = vmul.f32 %v704_v39, %v390_v38  ;;  %vm397_vm7 = vweird.f32 %v704_v39 }
 0x1d8   : > { %vm398_vm9 = vmor %vm396_vm8, %vm397_vm7 }
 0x1d9   : > { %v393_v41 = vsub.f32 1.0, %v392_v40 }
 0x1db   : > { %v394_v43 = vmul.f32 %v704_v39, %v393_v41 }
 0x1dd   : > { %v395_v45 = vadd.f32 %v704_v39, %v394_v43 }
 0x1df   : > { %v399_v47 = vsel %vm398_vm9, %v704_v39, %v395_v45 }
 0x1e0   : > { %v404_v48 = vsel %vm401_vm10, %v403_v46, %v399_v47 }
 0x1e1   : > { %v405_v49 = vsub.f32 %v404_v48, %v876_v19 }
 0x1e3   : > { %648 = vmatmul.msk.f32.vlgmr.msra.gmra.mxu3 %vm326_vm5, %v405_v49  ;;  %v431_v50 = vsel %vm352_vm6, %v405_v49, 0.0 }
 0x1e4   : > { %432 = vadd.xlane.f32.xlu1 %v431_v50 }
 0x257   : > { %v433_v51 = vpop.xlane.xlu1 %432 }
 0x258   : > { %v434_v52 = vmul.f32 0.125, %v433_v51 }
 0x25a   : > { %v435_v53 = vsub.f32 %v357_v27, %v434_v52 }
 0x25c   : > { %438 = vperm.xlu2 %696, %v435_v53  }
 0x266   : > { %v426_v54 = vpop.f32.mrf.mxu3 }
 0x267   : > { %v429_v55 = vmul.f32 0.125, %v426_v54 }
 0x269   : > { %v430_v56 = vsub.f32 %v351_v30, %v429_v55 }
 0x26b   : > { %650 = vmatmul.msk.f32.vlgmr.msrb.gmra.mxu1 %vm280_vm0, %v430_v56  ;;  %vm514_vm0 = vcmask 24576  }
 0x2b6   : > { %v439_v57 = vpop.permute.xlu2 %438 }
 0x2b7   : > { %v441_v58 = vperm.slane %v439_v57, 0 }
 0x2e8   : > { %v462_v59 = vpop.f32.mrf.mxu1 }
 0x2e9   : > { %v463_v60 = vadd.f32 %v462_v59, %v441_v58 }
 0x2eb   : > { %v465_v61 = vsub.f32 0.0, %v463_v60 }
 0x2ed   : > { %v466_v62 = vmul.f32 1.442695, %v465_v61 }
 0x2ef   : > { %705 = vpow2.f32 %v466_v62 }
 0x2f5   : > { %v706_v63 = vpop.eup %705 }
 0x2f6   : > { %v468_v0 = vadd.f32 1.0, %v706_v63 }
 0x2f8   : > { %707 = vrcp.f32 %v468_v0  ;;  %v480_v4 = vand.u32 2147483648, %v468_v0  ;;  %v478_v6 = vand.u32 2147483647, %v468_v0  ;;  %vm474_vm12 = vweird.f32 %v468_v0 }
 0x2fa   : > { %v481_v8 = vor.u32 1.1754944e-38, %v480_v4  ;;  %vm479_vm14 = vcmp.eq.f32.partialorder %v478_v6, 8.507059e+37 }
 0x2fe   : > { %v708_v1 = vpop.eup %707 }
 0x2ff   : > { %v470_v2 = vmul.f32 %v708_v1, %v468_v0  ;;  %vm475_vm11 = vweird.f32 %v708_v1 }
 0x300   : > { %vm476_vm13 = vmor %vm474_vm12, %vm475_vm11 }
 0x301   : > { %v471_v3 = vsub.f32 1.0, %v470_v2 }
 0x303   : > { %v472_v5 = vmul.f32 %v708_v1, %v471_v3 }
 0x305   : > { %v473_v7 = vadd.f32 %v708_v1, %v472_v5 }
 0x307   : > { %v477_v9 = vsel %vm476_vm13, %v708_v1, %v473_v7 }
 0x308   : > { %v482_v10 = vsel %vm479_vm14, %v481_v8, %v477_v9 }
 0x309   : > { %v483_v11 = vsub.f32 %v482_v10, %v876_v19 }
 0x30b   : > { %651 = vmatmul.msk.f32.vlgmr.msrb.gmra.mxu3 %vm326_vm5, %v483_v11  ;;  %v509_v12 = vsel %vm352_vm6, %v483_v11, 0.0 }
 0x30c   : > { %510 = vadd.xlane.f32.xlu2 %v509_v12 }
 0x37f   : > { %v511_v13 = vpop.xlane.xlu2 %510 }
 0x380   : > { %v512_v14 = vmul.f32 0.125, %v511_v13 }
 0x382   : > { %v513_v15 = vsub.f32 %v435_v53, %v512_v14 }
 0x384   : > { %517 = vst.msk [vmem:[%s269_s6] sm:$0x1] %vm516_vm15, %v513_v15 }
 0x38e   : > { %v504_v16 = vpop.f32.mrf.mxu3 }
 0x38f   : > { %v507_v17 = vmul.f32 0.125, %v504_v16 }
 0x391   : > { %v508_v18 = vsub.f32 %v430_v56, %v507_v17 }
 0x393   : > { %515 = vst.msk [vmem:[%s248_s11] sm:$0x1] %vm514_vm0, %v508_v18 }
 0x394   : > { %736 = shalt.err (!%p733_p3)
}
 0x395   : > { %654 = dma.vmem_to_hbm [thread:$0]  (%p842_p5), %s533_s12, 16, %s535_s13, %s519_s30  }
 0x396 PF: > { %p660_p4 = scmp.ge.s32.totalorder %s771_s21, 2  ;;  %s549_s26 = sand.u32 1, %s759_s18  }
 0x397   : > { %s550_s6 = scalar_lea.sflag [#allocation3], %s549_s26 }
 0x398   : > { %p657_p7 = pnand %p660_p4, %p846_p6 }
 0x39a   : > { %p658_p8 = pneg %p657_p7 }
 0x39c   : > { %754 = dma.done.wait (%p658_p8), %s550_s6, 16  }
 0x39d   : > { %756 = vsyncadd (%p658_p8), %s550_s6, 4294967280  ;;  %p16_p9 = scmp.ge.s32.totalorder %s829_s24, 4   ;;  %s933_s18 = smov %s763_s19 }
 0x39e   : > { %s934_s19 = smov %s767_s20  ;;  %s935_s20 = smov %s840_s27 }
 0x39f   : > { %s936_s21 = smov %s829_s24  ;;  %18 = sbr.rel (!%p16_p9) target bundleno = 3 (0x3), region = 92 }
 0x3a4   :  { %561 = vsyncpa [#allocation3], 1 }
 0x3a5   :  { %563 = vsyncpa [#allocation3 + $0x1], 1 }

</bundles_post_ra>
